<compile_context>
chip_gen: v5e
topology: v5e:2x2
jax: 0.10.0
libtpu: 0.0.40
codegen_flags: <defaults>
</compile_context>

<pallas_src>
import math
import functools

import jax
import jax.numpy as jnp
from jax.experimental import pallas as pl
from jax.experimental.pallas import tpu as pltpu

# Network architecture fixed by the PyTorch module.
H1, H2, OUT = 32, 16, 10
LANES = 128          # lane-padded width for all hidden / output activations
LN_EPS = 1e-5


def _round_up(x, m):
    return ((x + m - 1) // m) * m


# ----------------------------- fused Pallas kernel --------------------------

def _fused_cauchy_kan_kernel(x_ref, w1_ref, w2_ref, w3_ref, ln_ref, o_ref):
    """Whole CauchyKAN forward for one batch tile.

    x_ref : (TB, Fin)        input tile
    w*_ref: (2*Kpad, 128)    stacked [W_base^T ; (W_cauchy*scaler)^T], zero padded
    ln_ref: (4, 128)         rows = [gamma1, beta1, gamma2, beta2], zero padded
    o_ref : (TB, 128)        lane-dense output (valid cols = OUT)
    """
    x = x_ref[...].astype(jnp.float32)
    ln = ln_ref[...].astype(jnp.float32)

    def kan_layer(h, w_ref):
        # Merged base + cauchy branches: single K = 2*width MXU contraction.
        silu = h * jax.nn.sigmoid(h)                       # VPU + EUP
        ck = pl.reciprocal(1.0 + h * h, approx=True)       # EUP slot (free-ish)
        stacked = jnp.concatenate([silu, ck], axis=-1)     # (TB, 2*width)
        return jnp.dot(stacked, w_ref[...],
                       preferred_element_type=jnp.float32)  # (TB, 128)

    def layer_norm(h, gamma, beta, f):
        # h is lane-padded to 128; padded lanes are exactly zero (zero weight
        # columns), so sums over all lanes equal sums over the f valid lanes.
        inv_f = 1.0 / f
        mean = jnp.sum(h, axis=-1, keepdims=True) * inv_f
        lane = jax.lax.broadcasted_iota(jnp.int32, h.shape, 1)
        centered = jnp.where(lane < f, h - mean, 0.0)
        var = jnp.sum(centered * centered, axis=-1, keepdims=True) * inv_f
        y = centered * jax.lax.rsqrt(var + LN_EPS)
        # gamma/beta padded with zeros -> padded lanes stay exactly zero.
        return y * gamma + beta

    h = kan_layer(x, w1_ref)                                # (TB, 128)
    h = layer_norm(h, ln[0:1, :], ln[1:2, :], H1)
    h = kan_layer(h, w2_ref)
    h = layer_norm(h, ln[2:3, :], ln[3:4, :], H2)
    h = kan_layer(h, w3_ref)

    o_ref[...] = h.astype(o_ref.dtype)


# ----------------------------- forward wrapper -------------------------------

def cauchy_kan_forward(params, x):
    w1, w2, w3, lnp = params["w1"], params["w2"], params["w3"], params["ln"]
    n_features = w1.shape[0] // 2          # static (from weight shape)

    x = x.reshape(-1, n_features).astype(jnp.float32)
    B = x.shape[0]

    # Batch tiling: big batches -> 512-row tiles (pipelined, megacore-parallel,
    # sized for v7x's 64 MiB VMEM); tiny batches -> one full block (padded to
    # a multiple of 8 sublanes).
    TB = 512
    if B >= TB:
        Bp, tb = _round_up(B, TB), TB
    else:
        Bp = _round_up(max(B, 8), 8)
        tb = Bp
    if Bp != B:
        x = jnp.pad(x, ((0, Bp - B), (0, 0)))

    grid = (Bp // tb,)

    out = pl.pallas_call(
        _fused_cauchy_kan_kernel,
        out_shape=jax.ShapeDtypeStruct((Bp, LANES), jnp.float32),
        grid=grid,
        in_specs=[
            pl.BlockSpec((tb, n_features), lambda i: (i, 0)),   # batch tile
            pl.BlockSpec(w1.shape, lambda i: (0, 0)),           # resident
            pl.BlockSpec(w2.shape, lambda i: (0, 0)),           # resident
            pl.BlockSpec(w3.shape, lambda i: (0, 0)),           # resident
            pl.BlockSpec(lnp.shape, lambda i: (0, 0)),          # resident
        ],
        out_specs=pl.BlockSpec((tb, LANES), lambda i: (i, 0)),
        compiler_params=pltpu.CompilerParams(
            dimension_semantics=("parallel",),
        ),
    )(x, w1, w2, w3, lnp)

    return out[:B, :OUT]


# ------------------------ parameter initialization ---------------------------

def _kaiming_uniform(key, out_f, in_f, a):
    # Matches torch.nn.init.kaiming_uniform_ (leaky_relu nonlinearity).
    gain = math.sqrt(2.0 / (1.0 + a * a))
    bound = gain * math.sqrt(3.0 / in_f)
    return jax.random.uniform(key, (out_f, in_f), jnp.float32, -bound, bound)


def init_kan_linear(key, in_f, out_f, scale_noise=0.1, scale_base=1.0,
                    scale_cauchy=1.0):
    k1, k2, k3 = jax.random.split(key, 3)
    base_w = _kaiming_uniform(k1, out_f, in_f, a=math.sqrt(5.0) * scale_base)
    noise = (jax.random.uniform(k2, (out_f, in_f), jnp.float32) - 0.5) * scale_noise
    cauchy_w = noise  # enable_standalone_scale_cauchy=True -> factor 1.0
    cauchy_scaler = _kaiming_uniform(k3, out_f, in_f, a=math.sqrt(5.0) * scale_cauchy)
    return base_w, cauchy_w, cauchy_scaler


def _pack_stacked_weight(base_w, cauchy_w, cauchy_scaler, in_pad, out_pad):
    """Stack [W_base^T ; (W_cauchy*scaler)^T] into one zero-padded (2*in_pad, out_pad)
    matrix so each layer is a single MXU contraction with lane-dense output."""
    out_f, in_f = base_w.shape
    w = jnp.zeros((2 * in_pad, out_pad), jnp.float32)
    w = w.at[:in_f, :out_f].set(base_w.T)
    w = w.at[in_pad:in_pad + in_f, :out_f].set((cauchy_w * cauchy_scaler).T)
    return w


def init_cauchy_kan(key, n_features):
    k1, k2, k3 = jax.random.split(key, 3)
    l1 = init_kan_linear(k1, n_features, H1)
    l2 = init_kan_linear(k2, H1, H2)
    l3 = init_kan_linear(k3, H2, OUT)

    # Pre-transposed / pre-scaled / lane-padded weights (done once, not per call).
    w1 = _pack_stacked_weight(*l1, in_pad=n_features, out_pad=LANES)
    w2 = _pack_stacked_weight(*l2, in_pad=LANES, out_pad=LANES)
    w3 = _pack_stacked_weight(*l3, in_pad=LANES, out_pad=LANES)

    # LayerNorm params packed into one (4, 128) array: [g1, b1, g2, b2].
    ln = jnp.zeros((4, LANES), jnp.float32)
    ln = ln.at[0, :H1].set(1.0)   # gamma1 (beta1 row stays 0)
    ln = ln.at[2, :H2].set(1.0)   # gamma2 (beta2 row stays 0)

    return {
        "n_features": n_features,
        "w1": w1, "w2": w2, "w3": w3, "ln": ln,
        # raw params kept only for the pure-JAX reference check
        "raw": {
            "l1": l1, "l2": l2, "l3": l3,
            "ln1": (jnp.ones((H1,), jnp.float32), jnp.zeros((H1,), jnp.float32)),
            "ln2": (jnp.ones((H2,), jnp.float32), jnp.zeros((H2,), jnp.float32)),
        },
    }


# --------------------------- pure-JAX reference -------------------------------

def _ref_kan_linear(x, base_w, cauchy_w, cauchy_scaler):
    silu = x * jax.nn.sigmoid(x)
    ck = 1.0 / (1.0 + x * x)
    return silu @ base_w.T + ck @ (cauchy_w * cauchy_scaler).T


def _ref_layernorm(x, g, b):
    mean = jnp.mean(x, axis=-1, keepdims=True)
    var = jnp.mean(jnp.square(x - mean), axis=-1, keepdims=True)
    return (x - mean) * jax.lax.rsqrt(var + LN_EPS) * g + b


def cauchy_kan_reference(params, x):
    raw = params["raw"]
    x = x.reshape(-1, params["n_features"]).astype(jnp.float32)
    x = _ref_kan_linear(x, *raw["l1"])
    x = _ref_layernorm(x, *raw["ln1"])
    x = _ref_kan_linear(x, *raw["l2"])
    x = _ref_layernorm(x, *raw["ln2"])
    x = _ref_kan_linear(x, *raw["l3"])
    return x


# ----------------------------------- main ------------------------------------

if __name__ == "__main__":
    # TODO(synk): regularization_loss (training-time |W| sums) not implemented as a kernel.
    key = jax.random.PRNGKey(0)
    kp, kx = jax.random.split(key)

    n_features = 64  # small synthetic "image": 8x8
    params = init_cauchy_kan(kp, n_features)

    # input (2, 8, 8); forward flattens to (-1, n_features) = (2, 64)
    x = jax.random.normal(kx, (2, 8, 8), jnp.float32)

    out = cauchy_kan_forward(params, x)
    out = jax.block_until_ready(out)
    assert out.shape == (2, OUT), out.shape
    assert bool(jnp.all(jnp.isfinite(out)))

    # Loose tolerance: kernel uses the EUP approximate reciprocal for the Cauchy branch.
    ref = cauchy_kan_reference(params, x)
    assert bool(jnp.allclose(out, ref, atol=5e-2, rtol=5e-2)), \
        float(jnp.max(jnp.abs(out - ref)))

    print("KERNEL_OK")
</pallas_src>

<mosaic_0001>
module attributes {stable_mosaic.version = 11 : i64} {
  func.func @_fused_cauchy_kan_kernel(%arg0: i32, %arg1: memref<8x64xf32, #tpu.memory_space<vmem>>, %arg2: memref<128x128xf32, #tpu.memory_space<vmem>>, %arg3: memref<256x128xf32, #tpu.memory_space<vmem>>, %arg4: memref<256x128xf32, #tpu.memory_space<vmem>>, %arg5: memref<4x128xf32, #tpu.memory_space<vmem>>, %arg6: memref<8x128xf32, #tpu.memory_space<vmem>>) attributes {dimension_semantics = [#tpu.dimension_semantics<parallel>], iteration_bounds = array<i64: 1>, scalar_prefetch = 0 : i64, scratch_operands = 0 : i64, tpu.core_type = #tpu.core_type<tc>, window_params = [{transform_indices = @transform_0, window_bounds = array<i64: 8, 64>}, {pipeline_mode = #tpu.pipeline_mode<synchronous>, transform_indices = @transform_1, window_bounds = array<i64: 128, 128>}, {pipeline_mode = #tpu.pipeline_mode<synchronous>, transform_indices = @transform_2, window_bounds = array<i64: 256, 128>}, {pipeline_mode = #tpu.pipeline_mode<synchronous>, transform_indices = @transform_3, window_bounds = array<i64: 256, 128>}, {pipeline_mode = #tpu.pipeline_mode<synchronous>, transform_indices = @transform_4, window_bounds = array<i64: 4, 128>}, {transform_indices = @transform_5, window_bounds = array<i64: 8, 128>}]} {
    %c0 = arith.constant 0 : index
    %c0_0 = arith.constant 0 : index
    %0 = vector.load %arg1[%c0, %c0_0] : memref<8x64xf32, #tpu.memory_space<vmem>>, vector<8x64xf32>
    %c0_1 = arith.constant 0 : index
    %c0_2 = arith.constant 0 : index
    %1 = vector.load %arg5[%c0_1, %c0_2] : memref<4x128xf32, #tpu.memory_space<vmem>>, vector<4x128xf32>
    %2 = arith.negf %0 : vector<8x64xf32>
    %3 = math.exp %2 : vector<8x64xf32>
    %cst = arith.constant 1.000000e+00 : f32
    %4 = vector.broadcast %cst : f32 to vector<8x64xf32>
    %5 = arith.addf %4, %3 : vector<8x64xf32>
    %6 = arith.divf %4, %5 : vector<8x64xf32>
    %7 = arith.mulf %0, %6 : vector<8x64xf32>
    %8 = arith.mulf %0, %0 : vector<8x64xf32>
    %cst_3 = arith.constant 1.000000e+00 : f32
    %9 = vector.broadcast %cst_3 : f32 to vector<8x64xf32>
    %10 = arith.addf %9, %8 : vector<8x64xf32>
    %11 = tpu.reciprocal %10 {approx = true} : vector<8x64xf32> -> vector<8x64xf32>
    %12 = tpu.concatenate %7, %11 in 1 : vector<8x64xf32>, vector<8x64xf32> -> vector<8x128xf32>
    %c0_4 = arith.constant 0 : index
    %c0_5 = arith.constant 0 : index
    %13 = vector.load %arg2[%c0_4, %c0_5] : memref<128x128xf32, #tpu.memory_space<vmem>>, vector<128x128xf32>
    %cst_6 = arith.constant dense<0.000000e+00> : vector<8x128xf32>
    %14 = tpu.matmul %12, %13, %cst_6 {dimension_numbers = #tpu.dot_dimension_numbers<[1], [0], [0], [1], [0, 0, 1, 1], [], []>} : vector<8x128xf32>, vector<128x128xf32>, vector<8x128xf32> -> vector<8x128xf32>
    %15 = vector.extract_strided_slice %1 {offsets = [0, 0], sizes = [1, 128], strides = [1, 1]} : vector<4x128xf32> to vector<1x128xf32>
    %16 = vector.extract_strided_slice %1 {offsets = [1, 0], sizes = [1, 128], strides = [1, 1]} : vector<4x128xf32> to vector<1x128xf32>
    %cst_7 = arith.constant dense<0.000000e+00> : vector<8xf32>
    %17 = vector.multi_reduction <add>, %14, %cst_7 [1] : vector<8x128xf32> to vector<8xf32>
    %18 = vector.shape_cast %17 : vector<8xf32> to vector<8x1xf32>
    %cst_8 = arith.constant 3.125000e-02 : f32
    %19 = vector.broadcast %cst_8 : f32 to vector<8x1xf32>
    %20 = arith.mulf %18, %19 : vector<8x1xf32>
    %21 = tpu.iota {dimensions = array<i32: 1>} : vector<8x128xi32>
    %c32_i32 = arith.constant 32 : i32
    %22 = vector.broadcast %c32_i32 : i32 to vector<8x128xi32>
    %23 = arith.cmpi slt, %21, %22 : vector<8x128xi32>
    %24 = vector.broadcast %20 : vector<8x1xf32> to vector<8x128xf32>
    %25 = arith.subf %14, %24 : vector<8x128xf32>
    %cst_9 = arith.constant 0.000000e+00 : f32
    %26 = vector.broadcast %cst_9 : f32 to vector<8x128xf32>
    %27 = arith.select %23, %25, %26 : vector<8x128xi1>, vector<8x128xf32>
    %28 = arith.mulf %27, %27 : vector<8x128xf32>
    %cst_10 = arith.constant dense<0.000000e+00> : vector<8xf32>
    %29 = vector.multi_reduction <add>, %28, %cst_10 [1] : vector<8x128xf32> to vector<8xf32>
    %30 = vector.shape_cast %29 : vector<8xf32> to vector<8x1xf32>
    %cst_11 = arith.constant 3.125000e-02 : f32
    %31 = vector.broadcast %cst_11 : f32 to vector<8x1xf32>
    %32 = arith.mulf %30, %31 : vector<8x1xf32>
    %cst_12 = arith.constant 9.99999974E-6 : f32
    %33 = vector.broadcast %cst_12 : f32 to vector<8x1xf32>
    %34 = arith.addf %32, %33 : vector<8x1xf32>
    %35 = math.rsqrt %34 : vector<8x1xf32>
    %36 = vector.broadcast %35 : vector<8x1xf32> to vector<8x128xf32>
    %37 = arith.mulf %27, %36 : vector<8x128xf32>
    %38 = vector.broadcast %15 : vector<1x128xf32> to vector<8x128xf32>
    %39 = arith.mulf %37, %38 : vector<8x128xf32>
    %40 = vector.broadcast %16 : vector<1x128xf32> to vector<8x128xf32>
    %41 = arith.addf %39, %40 : vector<8x128xf32>
    %42 = arith.negf %41 : vector<8x128xf32>
    %43 = math.exp %42 : vector<8x128xf32>
    %cst_13 = arith.constant 1.000000e+00 : f32
    %44 = vector.broadcast %cst_13 : f32 to vector<8x128xf32>
    %45 = arith.addf %44, %43 : vector<8x128xf32>
    %46 = arith.divf %44, %45 : vector<8x128xf32>
    %47 = arith.mulf %41, %46 : vector<8x128xf32>
    %48 = arith.mulf %41, %41 : vector<8x128xf32>
    %cst_14 = arith.constant 1.000000e+00 : f32
    %49 = vector.broadcast %cst_14 : f32 to vector<8x128xf32>
    %50 = arith.addf %49, %48 : vector<8x128xf32>
    %51 = tpu.reciprocal %50 {approx = true} : vector<8x128xf32> -> vector<8x128xf32>
    %52 = tpu.concatenate %47, %51 in 1 : vector<8x128xf32>, vector<8x128xf32> -> vector<8x256xf32>
    %c0_15 = arith.constant 0 : index
    %c0_16 = arith.constant 0 : index
    %53 = vector.load %arg3[%c0_15, %c0_16] : memref<256x128xf32, #tpu.memory_space<vmem>>, vector<256x128xf32>
    %cst_17 = arith.constant dense<0.000000e+00> : vector<8x128xf32>
    %54 = tpu.matmul %52, %53, %cst_17 {dimension_numbers = #tpu.dot_dimension_numbers<[1], [0], [0], [1], [0, 0, 1, 1], [], []>} : vector<8x256xf32>, vector<256x128xf32>, vector<8x128xf32> -> vector<8x128xf32>
    %55 = vector.extract_strided_slice %1 {offsets = [2, 0], sizes = [1, 128], strides = [1, 1]} : vector<4x128xf32> to vector<1x128xf32>
    %56 = vector.extract_strided_slice %1 {offsets = [3, 0], sizes = [1, 128], strides = [1, 1]} : vector<4x128xf32> to vector<1x128xf32>
    %cst_18 = arith.constant dense<0.000000e+00> : vector<8xf32>
    %57 = vector.multi_reduction <add>, %54, %cst_18 [1] : vector<8x128xf32> to vector<8xf32>
    %58 = vector.shape_cast %57 : vector<8xf32> to vector<8x1xf32>
    %cst_19 = arith.constant 6.250000e-02 : f32
    %59 = vector.broadcast %cst_19 : f32 to vector<8x1xf32>
    %60 = arith.mulf %58, %59 : vector<8x1xf32>
    %61 = tpu.iota {dimensions = array<i32: 1>} : vector<8x128xi32>
    %c16_i32 = arith.constant 16 : i32
    %62 = vector.broadcast %c16_i32 : i32 to vector<8x128xi32>
    %63 = arith.cmpi slt, %61, %62 : vector<8x128xi32>
    %64 = vector.broadcast %60 : vector<8x1xf32> to vector<8x128xf32>
    %65 = arith.subf %54, %64 : vector<8x128xf32>
    %cst_20 = arith.constant 0.000000e+00 : f32
    %66 = vector.broadcast %cst_20 : f32 to vector<8x128xf32>
    %67 = arith.select %63, %65, %66 : vector<8x128xi1>, vector<8x128xf32>
    %68 = arith.mulf %67, %67 : vector<8x128xf32>
    %cst_21 = arith.constant dense<0.000000e+00> : vector<8xf32>
    %69 = vector.multi_reduction <add>, %68, %cst_21 [1] : vector<8x128xf32> to vector<8xf32>
    %70 = vector.shape_cast %69 : vector<8xf32> to vector<8x1xf32>
    %cst_22 = arith.constant 6.250000e-02 : f32
    %71 = vector.broadcast %cst_22 : f32 to vector<8x1xf32>
    %72 = arith.mulf %70, %71 : vector<8x1xf32>
    %cst_23 = arith.constant 9.99999974E-6 : f32
    %73 = vector.broadcast %cst_23 : f32 to vector<8x1xf32>
    %74 = arith.addf %72, %73 : vector<8x1xf32>
    %75 = math.rsqrt %74 : vector<8x1xf32>
    %76 = vector.broadcast %75 : vector<8x1xf32> to vector<8x128xf32>
    %77 = arith.mulf %67, %76 : vector<8x128xf32>
    %78 = vector.broadcast %55 : vector<1x128xf32> to vector<8x128xf32>
    %79 = arith.mulf %77, %78 : vector<8x128xf32>
    %80 = vector.broadcast %56 : vector<1x128xf32> to vector<8x128xf32>
    %81 = arith.addf %79, %80 : vector<8x128xf32>
    %82 = arith.negf %81 : vector<8x128xf32>
    %83 = math.exp %82 : vector<8x128xf32>
    %cst_24 = arith.constant 1.000000e+00 : f32
    %84 = vector.broadcast %cst_24 : f32 to vector<8x128xf32>
    %85 = arith.addf %84, %83 : vector<8x128xf32>
    %86 = arith.divf %84, %85 : vector<8x128xf32>
    %87 = arith.mulf %81, %86 : vector<8x128xf32>
    %88 = arith.mulf %81, %81 : vector<8x128xf32>
    %cst_25 = arith.constant 1.000000e+00 : f32
    %89 = vector.broadcast %cst_25 : f32 to vector<8x128xf32>
    %90 = arith.addf %89, %88 : vector<8x128xf32>
    %91 = tpu.reciprocal %90 {approx = true} : vector<8x128xf32> -> vector<8x128xf32>
    %92 = tpu.concatenate %87, %91 in 1 : vector<8x128xf32>, vector<8x128xf32> -> vector<8x256xf32>
    %c0_26 = arith.constant 0 : index
    %c0_27 = arith.constant 0 : index
    %93 = vector.load %arg4[%c0_26, %c0_27] : memref<256x128xf32, #tpu.memory_space<vmem>>, vector<256x128xf32>
    %cst_28 = arith.constant dense<0.000000e+00> : vector<8x128xf32>
    %94 = tpu.matmul %92, %93, %cst_28 {dimension_numbers = #tpu.dot_dimension_numbers<[1], [0], [0], [1], [0, 0, 1, 1], [], []>} : vector<8x256xf32>, vector<256x128xf32>, vector<8x128xf32> -> vector<8x128xf32>
    %c0_29 = arith.constant 0 : index
    %c0_30 = arith.constant 0 : index
    %95 = vector.load %arg6[%c0_29, %c0_30] : memref<8x128xf32, #tpu.memory_space<vmem>>, vector<8x128xf32>
    tpu.vector_store %arg6[%c0_29, %c0_30], %94 {strides = array<i32>} : memref<8x128xf32, #tpu.memory_space<vmem>>, vector<8x128xf32>,
    return
  }
  func.func @transform_0(%arg0: i32) -> (i32, i32) {
    %c0_i32 = arith.constant 0 : i32
    %c0_i32_0 = arith.constant 0 : i32
    return %arg0, %c0_i32 : i32, i32
  }
  func.func @transform_1(%arg0: i32) -> (i32, i32) {
    %c0_i32 = arith.constant 0 : i32
    %c0_i32_0 = arith.constant 0 : i32
    %c0_i32_1 = arith.constant 0 : i32
    return %c0_i32, %c0_i32_0 : i32, i32
  }
  func.func @transform_2(%arg0: i32) -> (i32, i32) {
    %c0_i32 = arith.constant 0 : i32
    %c0_i32_0 = arith.constant 0 : i32
    %c0_i32_1 = arith.constant 0 : i32
    return %c0_i32, %c0_i32_0 : i32, i32
  }
  func.func @transform_3(%arg0: i32) -> (i32, i32) {
    %c0_i32 = arith.constant 0 : i32
    %c0_i32_0 = arith.constant 0 : i32
    %c0_i32_1 = arith.constant 0 : i32
    return %c0_i32, %c0_i32_0 : i32, i32
  }
  func.func @transform_4(%arg0: i32) -> (i32, i32) {
    %c0_i32 = arith.constant 0 : i32
    %c0_i32_0 = arith.constant 0 : i32
    %c0_i32_1 = arith.constant 0 : i32
    return %c0_i32, %c0_i32_0 : i32, i32
  }
  func.func @transform_5(%arg0: i32) -> (i32, i32) {
    %c0_i32 = arith.constant 0 : i32
    %c0_i32_0 = arith.constant 0 : i32
    return %arg0, %c0_i32 : i32, i32
  }
}

</mosaic_0001>

<bundles_post_ra>
// kernel: tpu_custom_call.1
= control target key start
LH: loop header
LB: loop body
LE: loop exit
PB: predicated region body
PF: predicated region fallthrough
CT: control target
= control target key end

     0   :  { %10 = vsyncpa [#allocation3], 0  ;;  %s689_s0 = inlined_call_operand.hbm [shape: f32[8,64], index: 0, kind: input, shape index: {}]   ;;  %s690_s1 = inlined_call_operand.hbm [shape: f32[128,128], index: 1, kind: input, shape index: {}]   ;;  %s691_s2 = inlined_call_operand.hbm [shape: f32[256,128], index: 2, kind: input, shape index: {}]   ;;  %s692_s3 = inlined_call_operand.hbm [shape: f32[256,128], index: 3, kind: input, shape index: {}]   ;;  %s693_s4 = inlined_call_operand.hbm [shape: f32[4,128], index: 4, kind: input, shape index: {}]   ;;  %s694_s5 = inlined_call_operand.hbm [shape: f32[8,128], index: 5, kind: output, shape index: {}]  }
   0x1   :  { %11 = vsyncpa [#allocation6], 0 }
   0x2   :  { %12 = vsyncpa [#allocation9], 0  ;;  %s29_s20 = sshll.u32 %s690_s1, 4  ;;  %s30_s20 = int_to_ptr.hbm [resolvable:$true] %s29_s20 }
   0x3   :  { %13 = vsyncpa [#allocation4], 0  ;;  %s612_s21 = smov [#allocation5]   ;;  %s55_s25 = sshll.u32 %s692_s3, 4  ;;  %s56_s25 = int_to_ptr.hbm [resolvable:$true] %s55_s25 }
   0x4   :  { %s31_s22 = sshll.u32 %s612_s21, 4  ;;  %s613_s26 = smov 128   ;;  %s32_s22 = int_to_ptr.vmem [resolvable:$true] %s31_s22 }
   0x5   :  { %s614_s27 = smov 8   ;;  %s615_s28 = smov [#allocation8]  }
   0x6   :  { %37 = dma.hbm_to_vmem [thread:$0]  %s30_s20, 2048, %s32_s22, [#allocation6], %s613_s26, %s613_s26, %s614_s27  }
   0x7   :  { %s57_s29 = sshll.u32 %s615_s28, 4  ;;  %s19_s7 = sshll.u32 %s689_s0, 4  ;;  %s58_s29 = int_to_ptr.vmem [resolvable:$true] %s57_s29  ;;  %s20_s7 = int_to_ptr.hbm [resolvable:$true] %s19_s7 }
   0x8   :  { %63 = dma.hbm_to_vmem [thread:$0]  %s56_s25, 4096, %s58_s29, [#allocation9], %s613_s26, %s613_s26, %s614_s27  }
   0x9   :  { %s42_s9 = sshll.u32 %s691_s2, 4  ;;  %s616_s10 = smov [#allocation2]   ;;  %s43_s9 = int_to_ptr.hbm [resolvable:$true] %s42_s9 }
   0xa   :  { %s21_s11 = sshll.u32 %s616_s10, 4  ;;  %s617_s3 = smov [#allocation7]   ;;  %s22_s11 = int_to_ptr.vmem [resolvable:$true] %s21_s11 }
   0xb   :  { %24 = dma.hbm_to_vmem [thread:$0]  %s20_s7, 128, %s22_s11, [#allocation3]  }
   0xc   :  { %s44_s12 = sshll.u32 %s617_s3, 4  ;;  %s69_s15 = sshll.u32 %s693_s4, 4  ;;  %s45_s12 = int_to_ptr.vmem [resolvable:$true] %s44_s12  ;;  %s70_s15 = int_to_ptr.hbm [resolvable:$true] %s69_s15 }
   0xd   :  { %50 = dma.hbm_to_vmem [thread:$0]  %s43_s9, 4096, %s45_s12, [#allocation6], %s613_s26, %s613_s26, %s614_s27  }
   0xe   :  { %s618_s0 = smov [#allocation10]  }
   0xf   :  { %s71_s16 = sshll.u32 %s618_s0, 4  ;;  %s72_s16 = int_to_ptr.vmem [resolvable:$true] %s71_s16 }
  0x10   :  { %74 = dma.hbm_to_vmem [thread:$0]  %s70_s15, 64, %s72_s16, [#allocation9]  }
  0x11   :  { %604 = dma.done.wait [#allocation3], 128  }
  0x12   :  { %605 = vsyncadd [#allocation3], 4294967168 }
  0x13   :  { %606 = dma.done.wait [#allocation6], 6144  }
  0x14   :  { %607 = vsyncadd [#allocation6], 4294961152 }
  0x15   :  { %608 = dma.done.wait [#allocation9], 4160  }
  0x16   :  { %609 = vsyncadd [#allocation9], 4294963136  ;;  %v95_v0 = vld [vmem:[#allocation2] sm:$0xff]  ;;  %v140_v2 = vld [vmem:[#allocation5 + $0x70] sm:$0xff]  ;;  %s619_s2 = smov 64   ;;  %vm124_vm4 = vcmask 523264   ;;  %v165_v37 = vlaneseq }
  0x17   :  { %v141_v1 = vld [vmem:[#allocation5 + $0x78] sm:$0xff]  ;;  %v117_v3 = vmul.f32 %v95_v0, %v95_v0  ;;  %v139_v4 = vld [vmem:[#allocation5 + $0x68] sm:$0xff]  ;;  %v138_v6 = vld [vmem:[#allocation5 + $0x60] sm:$0xff]  ;;  %v426_v19 = vmul.f32 -1.442695, %v95_v0  ;;  %s620_s4 = smov [#allocation11]  }
  0x18   :  { %142 = vmatpush.msra.mxu0 %v141_v1  ;;  %v137_v7 = vld [vmem:[#allocation5 + $0x58] sm:$0xff]  ;;  %v136_v8 = vld [vmem:[#allocation5 + $0x50] sm:$0xff]  ;;  %v135_v9 = vld [vmem:[#allocation5 + $0x48] sm:$0xff]  ;;  %v666_v38 = vand.u32 127, %v165_v37  ;;  %s412_s17 = sshll.u32 %s620_s4, 4  ;;  %s414_s20 = sshll.u32 %s694_s5, 4  ;;  %s413_s17 = int_to_ptr.vmem [resolvable:$true] %s412_s17  ;;  %s415_s20 = int_to_ptr.hbm [resolvable:$true] %s414_s20 }
  0x19   :  { %v118_v5 = vadd.f32 1.0, %v117_v3  ;;  %v134_v11 = vld [vmem:[#allocation5 + $0x40] sm:$0xff]  ;;  %v133_v12 = vld [vmem:[#allocation5 + $0x38] sm:$0xff]  ;;  %v132_v13 = vld [vmem:[#allocation5 + $0x30] sm:$0xff] }
  0x1a   :  { %143 = vmatpush.msra.mxu0 %v140_v2  ;;  %v131_v14 = vld [vmem:[#allocation5 + $0x28] sm:$0xff]  ;;  %v130_v15 = vld [vmem:[#allocation5 + $0x20] sm:$0xff]  ;;  %v129_v16 = vld [vmem:[#allocation5 + $0x18] sm:$0xff]  ;;  %vm167_vm5 = vcmp.lt.s32.totalorder %v666_v38, 32  ;;  %vm288_vm13 = vcmp.lt.s32.totalorder %v666_v38, 16 }
  0x1b   :  { %438 = vrcp.f32 %v118_v5  ;;  %v128_v17 = vld [vmem:[#allocation5 + $0x10] sm:$0xff]  ;;  %v127_v18 = vld [vmem:[#allocation5 + $0x8] sm:$0xff]  ;;  %v126_v22 = vld [vmem:[#allocation5] sm:$0xff] }
  0x1c   :  { %144 = vmatpush.msra.mxu0 %v139_v4  ;;  %440 = vpow2.f32 %v426_v19  ;;  %v244_v44 = vld [vmem:[#allocation7 + $0xf8] sm:$0xff]  ;;  %v243_v45 = vld [vmem:[#allocation7 + $0xf0] sm:$0xff]  ;;  %v242_v46 = vld [vmem:[#allocation7 + $0xe8] sm:$0xff] }
  0x1d   :  { %265 = vmatpush.msra.mxu2 %v244_v44  ;;  %v241_v47 = vld [vmem:[#allocation7 + $0xe0] sm:$0xff]  ;;  %v240_v48 = vld [vmem:[#allocation7 + $0xd8] sm:$0xff]  ;;  %v239_v49 = vld [vmem:[#allocation7 + $0xd0] sm:$0xff] }
  0x1e   :  { %145 = vmatpush.msra.mxu0 %v138_v6  ;;  %v238_v50 = vld [vmem:[#allocation7 + $0xc8] sm:$0xff]  ;;  %v237_v51 = vld [vmem:[#allocation7 + $0xc0] sm:$0xff]  ;;  %v236_v52 = vld [vmem:[#allocation7 + $0xb8] sm:$0xff] }
  0x1f   :  { %266 = vmatpush.msra.mxu2 %v243_v45  ;;  %v235_v53 = vld [vmem:[#allocation7 + $0xb0] sm:$0xff]  ;;  %v228_v54 = vld [vmem:[#allocation7 + $0x78] sm:$0xff]  ;;  %v234_v55 = vld [vmem:[#allocation7 + $0xa8] sm:$0xff] }
  0x20   :  { %146 = vmatpush.msra.mxu0 %v137_v7  ;;  %245 = vmatpush.msra.mxu1 %v228_v54  ;;  %v227_v56 = vld [vmem:[#allocation7 + $0x70] sm:$0xff]  ;;  %v226_v57 = vld [vmem:[#allocation7 + $0x68] sm:$0xff]  ;;  %v233_v58 = vld [vmem:[#allocation7 + $0xa0] sm:$0xff] }
  0x21   :  { %v439_v10 = vpop.eup %438  ;;  %267 = vmatpush.msra.mxu2 %v242_v46  ;;  %v225_v59 = vld [vmem:[#allocation7 + $0x60] sm:$0xff]  ;;  %v232_v60 = vld [vmem:[#allocation7 + $0x98] sm:$0xff]  ;;  %v231_v63 = vld [vmem:[#allocation7 + $0x90] sm:$0xff] }
  0x22   :  { %147 = vmatpush.msra.mxu0 %v136_v8  ;;  %121 = vrot.lane.b32.xlu0 %v439_v10, %s619_s2  ;;  %v441_v20 = vpop.eup %440  ;;  %v224_v61 = vld [vmem:[#allocation7 + $0x58] sm:$0xff]  ;;  %v223_v1 = vld [vmem:[#allocation7 + $0x50] sm:$0xff]  ;;  %v230_v2 = vld [vmem:[#allocation7 + $0x88] sm:$0xff] }
  0x23   :  { %v100_v21 = vadd.f32 1.0, %v441_v20  ;;  %268 = vmatpush.msra.mxu2 %v241_v47  ;;  %246 = vmatpush.msra.mxu1 %v227_v56  ;;  %v222_v4 = vld [vmem:[#allocation7 + $0x48] sm:$0xff]  ;;  %v229_v5 = vld [vmem:[#allocation7 + $0x80] sm:$0xff]  ;;  %v220_v7 = vld [vmem:[#allocation7 + $0x38] sm:$0xff] }
  0x24   :  { %148 = vmatpush.msra.mxu0 %v135_v9  ;;  %v221_v6 = vld [vmem:[#allocation7 + $0x40] sm:$0xff]  ;;  %v219_v8 = vld [vmem:[#allocation7 + $0x30] sm:$0xff]  ;;  %v214_v20 = vld [vmem:[#allocation7 + $0x8] sm:$0xff] }
  0x25   :  { %442 = vrcp.f32 %v100_v21  ;;  %vm106_vm0 = vweird.f32 %v100_v21  ;;  %v112_v27 = vand.u32 2147483648, %v100_v21  ;;  %v110_v29 = vand.u32 2147483647, %v100_v21  ;;  %269 = vmatpush.msra.mxu2 %v240_v48  ;;  %247 = vmatpush.msra.mxu1 %v226_v57  ;;  %v365_v54 = vld [vmem:[#allocation8 + $0xf8] sm:$0xff]  ;;  %v363_v56 = vld [vmem:[#allocation8 + $0xe8] sm:$0xff]  ;;  %v362_v57 = vld [vmem:[#allocation8 + $0xe0] sm:$0xff] }
  0x26   :  { %149 = vmatpush.msra.mxu0 %v134_v11  ;;  %v218_v11 = vld [vmem:[#allocation7 + $0x28] sm:$0xff] }
  0x27   :  { %v113_v30 = vor.u32 1.1754944e-38, %v112_v27  ;;  %vm111_vm3 = vcmp.eq.f32.partialorder %v110_v29, 8.507059e+37  ;;  %270 = vmatpush.msra.mxu2 %v239_v49  ;;  %248 = vmatpush.msra.mxu1 %v225_v59  ;;  %v360_v59 = vld [vmem:[#allocation8 + $0xd0] sm:$0xff]  ;;  %v359_v38 = vld [vmem:[#allocation8 + $0xc8] sm:$0xff] }
  0x28   :  { %150 = vmatpush.msra.mxu0 %v133_v12 }
  0x29   :  { %271 = vmatpush.msra.mxu2 %v238_v50  ;;  %249 = vmatpush.msra.mxu1 %v224_v61  ;;  %v357_v61 = vld [vmem:[#allocation8 + $0xb8] sm:$0xff] }
  0x2a   :  { %151 = vmatpush.msra.mxu0 %v132_v13  ;;  %v217_v13 = vld [vmem:[#allocation7 + $0x20] sm:$0xff] }
  0x2b   :  { %v443_v23 = vpop.eup %442  ;;  %272 = vmatpush.msra.mxu2 %v237_v51  ;;  %250 = vmatpush.msra.mxu1 %v223_v1  ;;  %v348_v1 = vld [vmem:[#allocation8 + $0x70] sm:$0xff] }
  0x2c   :  { %152 = vmatpush.msra.mxu0 %v131_v14  ;;  %v102_v24 = vmul.f32 %v443_v23, %v100_v21  ;;  %vm107_vm1 = vweird.f32 %v443_v23 }
  0x2d   :  { %vm108_vm2 = vmor %vm106_vm0, %vm107_vm1  ;;  %273 = vmatpush.msra.mxu2 %v236_v52  ;;  %251 = vmatpush.msra.mxu1 %v222_v4  ;;  %v353_v4 = vld [vmem:[#allocation8 + $0x98] sm:$0xff] }
  0x2e   :  { %153 = vmatpush.msra.mxu0 %v130_v15  ;;  %v103_v25 = vsub.f32 1.0, %v102_v24  ;;  %v216_v15 = vld [vmem:[#allocation7 + $0x18] sm:$0xff] }
  0x2f   :  { %274 = vmatpush.msra.mxu2 %v235_v53  ;;  %252 = vmatpush.msra.mxu1 %v221_v6 }
  0x30   :  { %154 = vmatpush.msra.mxu0 %v129_v16  ;;  %v104_v26 = vmul.f32 %v443_v23, %v103_v25  ;;  %v673_v16 = vld [vmem:[#allocation10] sm:$0xf] }
  0x31   :  { %275 = vmatpush.msra.mxu2 %v234_v55  ;;  %253 = vmatpush.msra.mxu1 %v220_v7  ;;  %v186_v21 = vperm.slane %v673_v16, 0  ;;  %v188_v25 = vperm.slane %v673_v16, 1  ;;  %v364_v55 = vld [vmem:[#allocation8 + $0xf0] sm:$0xff] }
  0x32   :  { %155 = vmatpush.msra.mxu0 %v128_v17  ;;  %v105_v28 = vadd.f32 %v443_v23, %v104_v26  ;;  %v352_v7 = vld [vmem:[#allocation8 + $0x90] sm:$0xff] }
  0x33   :  { %276 = vmatpush.msra.mxu2 %v233_v58  ;;  %254 = vmatpush.msra.mxu1 %v219_v8  ;;  %v361_v58 = vld [vmem:[#allocation8 + $0xd8] sm:$0xff] }
  0x34   :  { %156 = vmatpush.msra.mxu0 %v127_v18  ;;  %v109_v31 = vsel %vm108_vm2, %v443_v23, %v105_v28  ;;  %v215_v18 = vld [vmem:[#allocation7 + $0x10] sm:$0xff]  ;;  %v213_v23 = vld [vmem:[#allocation7] sm:$0xff] }
  0x35   :  { %v114_v32 = vsel %vm111_vm3, %v113_v30, %v109_v31  ;;  %277 = vmatpush.msra.mxu2 %v232_v60  ;;  %255 = vmatpush.msra.mxu1 %v218_v11  ;;  %v358_v60 = vld [vmem:[#allocation8 + $0xc0] sm:$0xff] }
  0x36   :  { %157 = vmatpush.msra.mxu0 %v126_v22  ;;  %v116_v33 = vmul.f32 %v114_v32, %v95_v0 }
  0x37   :  { %278 = vmatpush.msra.mxu2 %v231_v63  ;;  %256 = vmatpush.msra.mxu1 %v217_v13  ;;  %v349_v63 = vld [vmem:[#allocation8 + $0x78] sm:$0xff]  ;;  %v350_v13 = vld [vmem:[#allocation8 + $0x80] sm:$0xff] }
  0x38   :  { %386 = vmatpush.msrb.mxu0 %v365_v54  ;;  %366 = vmatpush.msra.mxu3 %v349_v63 }
  0x39   :  { %279 = vmatpush.msra.mxu2 %v230_v2  ;;  %257 = vmatpush.msra.mxu1 %v216_v15  ;;  %v354_v2 = vld [vmem:[#allocation8 + $0xa0] sm:$0xff] }
  0x3a   :  { %387 = vmatpush.msrb.mxu0 %v364_v55  ;;  %367 = vmatpush.msra.mxu3 %v348_v1  ;;  %v342_v15 = vld [vmem:[#allocation8 + $0x40] sm:$0xff] }
  0x3b   :  { %280 = vmatpush.msra.mxu2 %v229_v5  ;;  %258 = vmatpush.msra.mxu1 %v215_v18  ;;  %v346_v5 = vld [vmem:[#allocation8 + $0x60] sm:$0xff] }
  0x3c   :  { %388 = vmatpush.msrb.mxu0 %v363_v56 }
  0x3d   :  { %259 = vmatpush.msra.mxu1 %v214_v20 }
  0x3e   :  { %389 = vmatpush.msrb.mxu0 %v362_v57 }
  0x3f   :  { %260 = vmatpush.msra.mxu1 %v213_v23  ;;  %v338_v23 = vld [vmem:[#allocation8 + $0x20] sm:$0xff] }
  0x40   :  { %390 = vmatpush.msrb.mxu0 %v361_v58 }
  0x42   :  { %391 = vmatpush.msrb.mxu0 %v360_v59 }
  0x44   :  { %392 = vmatpush.msrb.mxu0 %v359_v38 }
  0x46   :  { %393 = vmatpush.msrb.mxu0 %v358_v60 }
  0x48   :  { %394 = vmatpush.msrb.mxu0 %v357_v61 }
  0x94   :  { %v122_v34 = vpop.permute.xlu0 %121 }
  0x95   :  { %v125_v35 = vsel %vm124_vm4, %v116_v33, %v122_v34 }
  0x96   :  { %158 = vmatmul.f32.vlgmr.msra.gmra.mxu0 %v125_v35 }
 0x113   :  { %v159_v36 = vpop.f32.mrf.mxu0 }
 0x114   :  { %162 = vadd.xlane.f32.xlu0 %v159_v36 }
 0x187   :  { %v163_v39 = vpop.xlane.xlu0 %162 }
 0x188   :  { %v164_v40 = vmul.f32 0.03125, %v163_v39 }
 0x18a   :  { %v168_v41 = vsub.f32 %v159_v36, %v164_v40 }
 0x18c   :  { %v669_v42 = vsel %vm167_vm5, %v168_v41, 0.0 }
 0x18d   :  { %v170_v43 = vmul.f32 %v669_v42, %v669_v42 }
 0x18f   :  { %171 = vadd.xlane.f32.xlu1 %v170_v43 }
 0x202   :  { %v172_v62 = vpop.xlane.xlu1 %171 }
 0x203   :  { %v173_v0 = vmul.f32 0.03125, %v172_v62  ;;  %v356_v62 = vld [vmem:[#allocation8 + $0xb0] sm:$0xff] }
 0x204   :  { %395 = vmatpush.msrb.mxu0 %v356_v62 }
 0x205   :  { %v174_v3 = vadd.f32 1e-05, %v173_v0  ;;  %v355_v0 = vld [vmem:[#allocation8 + $0xa8] sm:$0xff] }
 0x206   :  { %396 = vmatpush.msrb.mxu0 %v355_v0 }
 0x207   :  { %444 = vrsqrt.f32 %v174_v3  ;;  %vm181_vm7 = vweird.f32 %v174_v3 }
 0x208   :  { %397 = vmatpush.msrb.mxu0 %v354_v2 }
 0x20a   :  { %398 = vmatpush.msrb.mxu0 %v353_v4 }
 0x20c   :  { %399 = vmatpush.msrb.mxu0 %v352_v7 }
 0x20d   :  { %v445_v9 = vpop.eup %444 }
 0x20e   :  { %v176_v10 = vmul.f32 %v445_v9, %v174_v3  ;;  %vm182_vm6 = vweird.f32 %v445_v9  ;;  %v347_v3 = vld [vmem:[#allocation8 + $0x68] sm:$0xff] }
 0x20f   :  { %vm183_vm8 = vmor %vm181_vm7, %vm182_vm6  ;;  %368 = vmatpush.msra.mxu3 %v347_v3 }
 0x210   :  { %v177_v12 = vmul.f32 %v445_v9, %v176_v10  ;;  %v351_v10 = vld [vmem:[#allocation8 + $0x88] sm:$0xff] }
 0x211   :  { %369 = vmatpush.msra.mxu3 %v346_v5  ;;  %400 = vmatpush.msrb.mxu0 %v351_v10 }
 0x212   :  { %v178_v14 = vmul.f32 0.5, %v177_v12  ;;  %v344_v12 = vld [vmem:[#allocation8 + $0x50] sm:$0xff] }
 0x213   :  { %401 = vmatpush.msrb.mxu0 %v350_v13 }
 0x214   :  { %v179_v17 = vsub.f32 1.5, %v178_v14  ;;  %v343_v14 = vld [vmem:[#allocation8 + $0x48] sm:$0xff] }
 0x216   :  { %v180_v19 = vmul.f32 %v445_v9, %v179_v17  ;;  %v341_v17 = vld [vmem:[#allocation8 + $0x38] sm:$0xff] }
 0x218   :  { %v184_v22 = vsel %vm183_vm8, %v445_v9, %v180_v19  ;;  %v345_v9 = vld [vmem:[#allocation8 + $0x58] sm:$0xff]  ;;  %v340_v19 = vld [vmem:[#allocation8 + $0x30] sm:$0xff] }
 0x219   :  { %v185_v24 = vmul.f32 %v184_v22, %v669_v42  ;;  %370 = vmatpush.msra.mxu3 %v345_v9 }
 0x21b   :  { %v187_v26 = vmul.f32 %v186_v21, %v185_v24  ;;  %371 = vmatpush.msra.mxu3 %v344_v12  ;;  %v339_v21 = vld [vmem:[#allocation8 + $0x28] sm:$0xff] }
 0x21d   :  { %v189_v27 = vadd.f32 %v188_v25, %v187_v26  ;;  %372 = vmatpush.msra.mxu3 %v343_v14  ;;  %v337_v25 = vld [vmem:[#allocation8 + $0x18] sm:$0xff] }
 0x21f   :  { %v427_v28 = vmul.f32 -1.442695, %v189_v27  ;;  %v210_v29 = vmul.f32 %v189_v27, %v189_v27  ;;  %373 = vmatpush.msra.mxu3 %v342_v15 }
 0x221   :  { %446 = vpow2.f32 %v427_v28  ;;  %v211_v30 = vadd.f32 1.0, %v210_v29  ;;  %374 = vmatpush.msra.mxu3 %v341_v17  ;;  %v307_v29 = vperm.slane %v673_v16, 2 }
 0x223   :  { %448 = vrcp.f32 %v211_v30  ;;  %375 = vmatpush.msra.mxu3 %v340_v19  ;;  %v335_v30 = vld [vmem:[#allocation8 + $0x8] sm:$0xff] }
 0x225   :  { %376 = vmatpush.msra.mxu3 %v339_v21 }
 0x227   :  { %v447_v31 = vpop.eup %446  ;;  %377 = vmatpush.msra.mxu3 %v338_v23 }
 0x228   :  { %v193_v32 = vadd.f32 1.0, %v447_v31 }
 0x229   :  { %v449_v33 = vpop.eup %448  ;;  %378 = vmatpush.msra.mxu3 %v337_v25 }
 0x22a   :  { %281 = vmatmul.f32.vlgmr.msra.gmra.mxu2 %v449_v33  ;;  %450 = vrcp.f32 %v193_v32  ;;  %v205_v37 = vand.u32 2147483648, %v193_v32  ;;  %v203_v40 = vand.u32 2147483647, %v193_v32  ;;  %vm199_vm10 = vweird.f32 %v193_v32 }
 0x22c   :  { %v206_v42 = vor.u32 1.1754944e-38, %v205_v37  ;;  %vm204_vm12 = vcmp.eq.f32.partialorder %v203_v40, 8.507059e+37 }
 0x230   :  { %v451_v34 = vpop.eup %450 }
 0x231   :  { %v195_v35 = vmul.f32 %v451_v34, %v193_v32  ;;  %vm200_vm9 = vweird.f32 %v451_v34  ;;  %v309_v32 = vperm.slane %v673_v16, 3 }
 0x232   :  { %vm201_vm11 = vmor %vm199_vm10, %vm200_vm9 }
 0x233   :  { %v196_v36 = vsub.f32 1.0, %v195_v35 }
 0x235   :  { %v197_v39 = vmul.f32 %v451_v34, %v196_v36 }
 0x237   :  { %v198_v41 = vadd.f32 %v451_v34, %v197_v39 }
 0x239   :  { %v202_v43 = vsel %vm201_vm11, %v451_v34, %v198_v41  ;;  %v334_v34 = vld [vmem:[#allocation8] sm:$0xff] }
 0x23a   :  { %v207_v44 = vsel %vm204_vm12, %v206_v42, %v202_v43 }
 0x23b   :  { %v209_v45 = vmul.f32 %v207_v44, %v189_v27  ;;  %v336_v27 = vld [vmem:[#allocation8 + $0x10] sm:$0xff] }
 0x23c   :  { %379 = vmatpush.msra.mxu3 %v336_v27 }
 0x23d   :  { %261 = vmatmul.f32.vlgmr.msra.gmra.mxu1 %v209_v45 }
 0x23e   :  { %380 = vmatpush.msra.mxu3 %v335_v30 }
 0x240   :  { %381 = vmatpush.msra.mxu3 %v334_v34 }
 0x2ad   :  { %v282_v46 = vpop.f32.mrf.mxu2 }
 0x2ba   :  { %v262_v47 = vpop.f32.mrf.mxu1 }
 0x2bb   :  { %v283_v48 = vadd.f32 %v282_v46, %v262_v47 }
 0x2bd   :  { %285 = vadd.xlane.f32.xlu1 %v283_v48 }
 0x330   :  { %v286_v49 = vpop.xlane.xlu1 %285 }
 0x331   :  { %v287_v50 = vmul.f32 0.0625, %v286_v49 }
 0x333   :  { %v289_v51 = vsub.f32 %v283_v48, %v287_v50 }
 0x335   :  { %v679_v52 = vsel %vm288_vm13, %v289_v51, 0.0 }
 0x336   :  { %v291_v53 = vmul.f32 %v679_v52, %v679_v52 }
 0x338   :  { %292 = vadd.xlane.f32.xlu2 %v291_v53 }
 0x3ab   :  { %v293_v6 = vpop.xlane.xlu2 %292 }
 0x3ac   :  { %v294_v8 = vmul.f32 0.0625, %v293_v6 }
 0x3ae   :  { %v295_v11 = vadd.f32 1e-05, %v294_v8 }
 0x3b0   :  { %452 = vrsqrt.f32 %v295_v11  ;;  %vm302_vm15 = vweird.f32 %v295_v11 }
 0x3b6   :  { %v453_v18 = vpop.eup %452 }
 0x3b7   :  { %v297_v20 = vmul.f32 %v453_v18, %v295_v11  ;;  %vm303_vm14 = vweird.f32 %v453_v18 }
 0x3b8   :  { %vm304_vm0 = vmor %vm302_vm15, %vm303_vm14 }
 0x3b9   :  { %v298_v22 = vmul.f32 %v453_v18, %v297_v20 }
 0x3bb   :  { %v299_v24 = vmul.f32 0.5, %v298_v22 }
 0x3bd   :  { %v300_v26 = vsub.f32 1.5, %v299_v24 }
 0x3bf   :  { %v301_v28 = vmul.f32 %v453_v18, %v300_v26 }
 0x3c1   :  { %v305_v31 = vsel %vm304_vm0, %v453_v18, %v301_v28 }
 0x3c2   :  { %v306_v33 = vmul.f32 %v305_v31, %v679_v52 }
 0x3c4   :  { %v308_v35 = vmul.f32 %v307_v29, %v306_v33 }
 0x3c6   :  { %v310_v36 = vadd.f32 %v309_v32, %v308_v35 }
 0x3c8   :  { %v428_v37 = vmul.f32 -1.442695, %v310_v36  ;;  %v331_v39 = vmul.f32 %v310_v36, %v310_v36 }
 0x3ca   :  { %454 = vpow2.f32 %v428_v37  ;;  %v332_v40 = vadd.f32 1.0, %v331_v39 }
 0x3cc   :  { %456 = vrcp.f32 %v332_v40 }
 0x3d0   :  { %v455_v41 = vpop.eup %454 }
 0x3d1   :  { %v314_v42 = vadd.f32 1.0, %v455_v41 }
 0x3d2   :  { %v457_v43 = vpop.eup %456 }
 0x3d3   :  { %402 = vmatmul.f32.vlgmr.msrb.gmra.mxu0 %v457_v43  ;;  %458 = vrcp.f32 %v314_v42  ;;  %v326_v46 = vand.u32 2147483648, %v314_v42  ;;  %v324_v48 = vand.u32 2147483647, %v314_v42  ;;  %vm320_vm2 = vweird.f32 %v314_v42 }
 0x3d5   :  { %v327_v50 = vor.u32 1.1754944e-38, %v326_v46  ;;  %vm325_vm4 = vcmp.eq.f32.partialorder %v324_v48, 8.507059e+37 }
 0x3d9   :  { %v459_v44 = vpop.eup %458 }
 0x3da   :  { %v316_v45 = vmul.f32 %v459_v44, %v314_v42  ;;  %vm321_vm1 = vweird.f32 %v459_v44 }
 0x3db   :  { %vm322_vm3 = vmor %vm320_vm2, %vm321_vm1 }
 0x3dc   :  { %v317_v16 = vsub.f32 1.0, %v316_v45 }
 0x3de   :  { %v318_v47 = vmul.f32 %v459_v44, %v317_v16 }
 0x3e0   :  { %v319_v49 = vadd.f32 %v459_v44, %v318_v47 }
 0x3e2   :  { %v323_v51 = vsel %vm322_vm3, %v459_v44, %v319_v49 }
 0x3e3   :  { %v328_v52 = vsel %vm325_vm4, %v327_v50, %v323_v51 }
 0x3e4   :  { %v330_v53 = vmul.f32 %v328_v52, %v310_v36 }
 0x3e6   :  { %382 = vmatmul.f32.vlgmr.msra.gmra.mxu3 %v330_v53 }
 0x450   :  { %v403_v54 = vpop.f32.mrf.mxu0 }
 0x469   :  { %v383_v55 = vpop.f32.mrf.mxu3 }
 0x46a   :  { %v404_v56 = vadd.f32 %v403_v54, %v383_v55 }
 0x46c   :  { %406 = vst [vmem:[#allocation11] sm:$0xff] %v404_v56 }
 0x46d   :  { %417 = dma.vmem_to_hbm [thread:$0]  %s413_s17, 128, %s415_s20, [#allocation4]  }
 0x46e   :  { %610 = dma.done.wait [#allocation4], 128  }
 0x46f   :  { %611 = vsyncadd [#allocation4], 4294967168 }
 0x470   :  { %422 = vsyncpa [#allocation3], 1 }
 0x471   :  { %423 = vsyncpa [#allocation6], 1 }
 0x472   :  { %424 = vsyncpa [#allocation9], 1 }
 0x473   :  { %425 = vsyncpa [#allocation4], 1 }

</bundles_post_ra>
